<compile_context>
chip_gen: v7x
topology: tpu7x:2x2x1
jax: 0.10.0
libtpu: 0.0.40
codegen_flags: <defaults>
</compile_context>

<pallas_src>
import jax
import jax.numpy as jnp
from jax.experimental import pallas as pl
from jax.experimental.pallas import tpu as pltpu


def _hbm_copy_kernel(x_hbm, o_hbm):
    """Whole-buffer HBM->HBM DMA copy: no grid, no VMEM staging, no masked stores."""

    def body(sem):
        cp = pltpu.make_async_copy(x_hbm, o_hbm, sem)
        cp.start()
        cp.wait()

    pl.run_scoped(body, pltpu.SemaphoreType.DMA(()))


def flatten_layer(x: jax.Array, num_features: int, materialize: bool = False) -> jax.Array:
    """Equivalent of FlattenLayer(num_features)(x) -> x.view(-1, num_features).

    materialize=False (default / production): pure metadata reshape, zero cost.
    materialize=True: same result but routed through a single-DMA Pallas copy
    (kept here so the Pallas path is exercised and benchmarkable).
    """
    total = x.size
    assert total % num_features == 0, "num_features must divide total elements"
    n_rows = total // num_features

    if not materialize:
        # Recommended hot path: flatten is free.
        return jnp.reshape(x, (n_rows, num_features))

    itemsize = jnp.dtype(x.dtype).itemsize
    # Row-major reshape to the output layout (free, same element order as torch .view).
    x2d = jnp.reshape(x, (n_rows, num_features))

    return pl.pallas_call(
        _hbm_copy_kernel,
        out_shape=jax.ShapeDtypeStruct((n_rows, num_features), x.dtype),
        in_specs=[pl.BlockSpec(memory_space=pl.ANY)],
        out_specs=pl.BlockSpec(memory_space=pl.ANY),
        cost_estimate=pl.CostEstimate(
            flops=0, transcendentals=0, bytes_accessed=2 * total * itemsize
        ),
    )(x2d)


if __name__ == "__main__":
    # Small NCHW input consistent with a conv feature map feeding FlattenLayer.
    B, C, H, W = 2, 4, 16, 16
    num_features = C * H * W  # 1024

    key = jax.random.PRNGKey(0)
    x = jax.random.normal(key, (B, C, H, W), dtype=jnp.float32)

    # Reference semantics (row-major flatten, torch .view equivalent).
    ref = jnp.reshape(x, (-1, num_features))

    # Exercise the Pallas single-DMA copy path.
    y = flatten_layer(x, num_features, materialize=True)
    y = jax.block_until_ready(y)
    assert y.shape == (B, num_features), y.shape
    assert y.dtype == x.dtype
    assert bool(jnp.array_equal(y, ref))

    # Production (free) path gives the identical result.
    y_free = jax.block_until_ready(flatten_layer(x, num_features, materialize=False))
    assert bool(jnp.array_equal(y_free, ref))

    print("KERNEL_OK")
</pallas_src>

<mosaic_0001>
module attributes {stable_mosaic.version = 11 : i64} {
  func.func @_hbm_copy_kernel(%arg0: memref<2x1024xf32, #tpu.memory_space<any>>, %arg1: memref<2x1024xf32, #tpu.memory_space<any>>) attributes {dimension_semantics = [], scalar_prefetch = 0 : i64, scratch_operands = 0 : i64, tpu.core_type = #tpu.core_type<tc>} {
    "tpu.region"() ({
      %0 = tpu.sem_alloc : memref<!tpu.dma_semaphore, #tpu.memory_space<semaphore_mem>>
      tpu.enqueue_dma source(%arg0 : memref<2x1024xf32, #tpu.memory_space<any>>) target(%arg1 : memref<2x1024xf32, #tpu.memory_space<any>>) target_semaphore(%0 : memref<!tpu.dma_semaphore, #tpu.memory_space<semaphore_mem>>)
      tpu.wait_dma2 semaphore(%0 : memref<!tpu.dma_semaphore, #tpu.memory_space<semaphore_mem>>) src(%arg0 : memref<2x1024xf32, #tpu.memory_space<any>>) dst(%arg1 : memref<2x1024xf32, #tpu.memory_space<any>>)
      tpu.yield
    }) : () -> ()
    return
  }
}

</mosaic_0001>

<bundles_post_ra>
// kernel: tpu_custom_call.1
= control target key start
LH: loop header
LB: loop body
LE: loop exit
PB: predicated region body
PF: predicated region fallthrough
CT: control target
= control target key end

     0   :  { %s28_s6 = smov [#allocation2]   ;;  %s29_s7 = smov [#allocation3]   ;;  %s47_s0 = inlined_call_operand.hbm [shape: f32[2,1024], index: 0, kind: input, shape index: {}]   ;;  %s48_s1 = inlined_call_operand.hbm [shape: f32[2,1024], index: 1, kind: output, shape index: {}]  }
   0x1   :  { %s30_s8 = smov 0  }
   0x2   :  { %18 = dma.general %s47_s0, 256, %s48_s1, %s28_s6, %s29_s7, [#allocation4], %s30_s8, 0  }
   0x3   :  { %26 = dma.done.wait [#allocation2], 256 }
   0x4   :  { %27 = vsyncadd [#allocation2], 4294967040 }

</bundles_post_ra>
